<compile_context>
chip_gen: v5e
topology: v5e:2x2
jax: 0.10.0
libtpu: 0.0.40
codegen_flags: <defaults>
</compile_context>

<pallas_src>
import functools

import jax
import jax.numpy as jnp
from jax.experimental import pallas as pl
from jax.experimental.pallas import tpu as pltpu


# ----------------------------------------------------------------------------
# Kernel: per-row-tile partial KL (unnormalized by T^2/B)
# ----------------------------------------------------------------------------
def _kl_partial_kernel(stu_ref, tea_ref, out_ref, *, inv_t, batch, row_tile):
    pid = pl.program_id(0)

    stu = stu_ref[...].astype(jnp.float32)            # (TB, N)
    tea = tea_ref[...].astype(jnp.float32)            # (TB, N)
    inv_T = jnp.float32(inv_t)

    # student log-softmax of stu/T: max on raw scores, one multiply by 1/T
    stu_shift = (stu - jnp.max(stu, axis=-1, keepdims=True)) * inv_T
    log_p_s = stu_shift - jnp.log(
        jnp.sum(jnp.exp(stu_shift), axis=-1, keepdims=True)
    )                                                  # (TB, N)

    # teacher softmax terms (p_t never materialized: fold 1/tea_sum per row)
    tea_shift = (tea - jnp.max(tea, axis=-1, keepdims=True)) * inv_T
    tea_exp = jnp.exp(tea_shift)                       # (TB, N)
    tea_sum = jnp.sum(tea_exp, axis=-1, keepdims=True) # (TB, 1)
    log_tea_sum = jnp.log(tea_sum)                     # (TB, 1)

    # per-row KL numerator: sum_n exp(tea_shift) * (log p_t - log p_s)
    row_num = jnp.sum(
        tea_exp * ((tea_shift - log_tea_sum) - log_p_s),
        axis=-1, keepdims=True,
    )                                                  # (TB, 1)
    kl_row = row_num / tea_sum                         # one exact divide per row

    # mask rows past the real batch size (partial last tile)
    row_ids = pid * row_tile + jax.lax.broadcasted_iota(
        jnp.int32, (row_tile, 1), 0
    )
    kl_row = jnp.where(row_ids < batch, kl_row, 0.0)

    partial = jnp.sum(kl_row)                          # scalar partial for this tile
    # lane-dense, unmasked store of the broadcast partial
    out_ref[...] = jnp.broadcast_to(partial, out_ref.shape)


# ----------------------------------------------------------------------------
# Row-tile sizing: keep the double-buffered inputs + f32 temporaries well under
# the scoped-VMEM limit (conservative for v5e's 16 MiB default and v7x's 64 MiB
# physical VMEM).
# ----------------------------------------------------------------------------
def _choose_row_tile(batch, n, itemsize):
    budget_bytes = 32 * 1024 * 1024
    # 2 inputs x 2 pipeline buffers (input dtype) + ~6 live (TB, N) f32 temps
    per_row_bytes = n * (4 * itemsize + 24)
    tb = budget_bytes // max(per_row_bytes, 1)
    if tb >= batch:
        return batch                     # single row-block (full dim is legal)
    tb = max(16, (tb // 16) * 16)        # multiple of 16: valid for f32 & bf16
    return min(tb, batch)


# ----------------------------------------------------------------------------
# Distillation loss (jitted; shapes/temperature static)
# ----------------------------------------------------------------------------
@functools.partial(jax.jit, static_argnames=("temperature", "row_tile"))
def _kl_distill_loss(stu_dis, tea_dis, *, temperature=1.0, row_tile=None):
    B, N = stu_dis.shape
    T = float(temperature)
    TB = int(row_tile) if row_tile is not None else _choose_row_tile(
        B, N, jnp.dtype(stu_dis.dtype).itemsize
    )
    num_blocks = pl.cdiv(B, TB)

    kernel = functools.partial(
        _kl_partial_kernel, inv_t=1.0 / T, batch=int(B), row_tile=int(TB)
    )

    partials = pl.pallas_call(
        kernel,
        out_shape=jax.ShapeDtypeStruct((num_blocks, 8, 128), jnp.float32),
        grid=(num_blocks,),
        in_specs=[
            pl.BlockSpec((TB, N), lambda i: (i, 0)),
            pl.BlockSpec((TB, N), lambda i: (i, 0)),
        ],
        out_specs=pl.BlockSpec((1, 8, 128), lambda i: (i, 0, 0)),
        compiler_params=pltpu.CompilerParams(
            dimension_semantics=("parallel",),       # independent row tiles
            vmem_limit_bytes=48 * 1024 * 1024,
        ),
    )(stu_dis, tea_dis)

    # trivial final reduction + Hinton scaling outside the kernel
    return jnp.sum(partials[:, 0, 0]) * (T * T) / B


# ----------------------------------------------------------------------------
# Wrapper mirroring Imitation_SingleTeacher.forward
# ----------------------------------------------------------------------------
def constant_preprocess(score):
    # 'constant' score preprocess -> identity
    return score, None, None


def imitation_single_teacher_forward(stu_dis, tea_dis, *, temperature=1.0,
                                     prefix="", row_tile=None):
    stu_dis, _, _ = constant_preprocess(stu_dis)
    tea_dis, _, _ = constant_preprocess(tea_dis)
    loss = _kl_distill_loss(stu_dis, tea_dis, temperature=temperature,
                            row_tile=row_tile)
    # No host sync here (original module calls loss.item(); that is left to the
    # caller so the forward stays async/jit/grad friendly).
    loss_record = {"soft_loss" + prefix: loss}
    return loss, loss_record


# Pure-JAX reference (for sanity check)
def _ref_loss(stu, tea, temperature=1.0):
    T = temperature
    log_p_s = jax.nn.log_softmax(stu.astype(jnp.float32) / T, axis=1)
    p_t = jax.nn.softmax(tea.astype(jnp.float32) / T, axis=1)
    log_p_t = jax.nn.log_softmax(tea.astype(jnp.float32) / T, axis=1)
    return jnp.sum(p_t * (log_p_t - log_p_s)) / stu.shape[0] * T * T


if __name__ == "__main__":
    key = jax.random.PRNGKey(0)

    # Case 1: tiny batch, single tile, T = 1.0, f32
    B, N = 8, 128
    k1, k2, key = jax.random.split(key, 3)
    stu = jax.random.normal(k1, (B, N), dtype=jnp.float32)
    tea = jax.random.normal(k2, (B, N), dtype=jnp.float32)
    loss, rec = imitation_single_teacher_forward(stu, tea, temperature=1.0)
    loss = jax.block_until_ready(loss)
    ref = _ref_loss(stu, tea, temperature=1.0)
    assert jnp.allclose(loss, ref, atol=1e-5, rtol=1e-5), (loss, ref)

    # Case 2: non-multiple-of-tile batch with forced tiling + masking, T = 2.5
    B, N = 24, 384
    k1, k2, key = jax.random.split(key, 3)
    stu = jax.random.normal(k1, (B, N), dtype=jnp.float32) * 2.0
    tea = jax.random.normal(k2, (B, N), dtype=jnp.float32) * 2.0
    loss, rec = imitation_single_teacher_forward(
        stu, tea, temperature=2.5, prefix="_t25", row_tile=16
    )
    loss = jax.block_until_ready(loss)
    ref = _ref_loss(stu, tea, temperature=2.5)
    assert jnp.allclose(loss, ref, atol=1e-5, rtol=1e-5), (loss, ref)

    # Case 3: bf16 inputs (HBM-bandwidth-friendly path), f32 accumulation inside
    B, N = 16, 256
    k1, k2, key = jax.random.split(key, 3)
    stu = jax.random.normal(k1, (B, N), dtype=jnp.float32).astype(jnp.bfloat16)
    tea = jax.random.normal(k2, (B, N), dtype=jnp.float32).astype(jnp.bfloat16)
    loss, rec = imitation_single_teacher_forward(stu, tea, temperature=1.0)
    loss = jax.block_until_ready(loss)
    ref = _ref_loss(stu, tea, temperature=1.0)
    assert jnp.allclose(loss, ref, atol=1e-4, rtol=1e-4), (loss, ref)

    print("KERNEL_OK")
</pallas_src>

<mosaic_0001>
module attributes {stable_mosaic.version = 11 : i64} {
  func.func @_kl_partial_kernel(%arg0: i32, %arg1: memref<8x128xf32, #tpu.memory_space<vmem>>, %arg2: memref<8x128xf32, #tpu.memory_space<vmem>>, %arg3: memref<1x8x128xf32, #tpu.memory_space<vmem>>) attributes {dimension_semantics = [#tpu.dimension_semantics<parallel>], iteration_bounds = array<i64: 1>, scalar_prefetch = 0 : i64, scratch_operands = 0 : i64, tpu.core_type = #tpu.core_type<tc>, window_params = [{transform_indices = @transform_0, window_bounds = array<i64: 8, 128>}, {transform_indices = @transform_1, window_bounds = array<i64: 8, 128>}, {transform_indices = @transform_2, window_bounds = array<i64: 1, 8, 128>}]} {
    %c0 = arith.constant 0 : index
    %c0_0 = arith.constant 0 : index
    %0 = vector.load %arg1[%c0, %c0_0] : memref<8x128xf32, #tpu.memory_space<vmem>>, vector<8x128xf32>
    %c0_1 = arith.constant 0 : index
    %c0_2 = arith.constant 0 : index
    %1 = vector.load %arg2[%c0_1, %c0_2] : memref<8x128xf32, #tpu.memory_space<vmem>>, vector<8x128xf32>
    %cst = arith.constant dense<0xFF800000> : vector<8xf32>
    %2 = vector.multi_reduction <maximumf>, %0, %cst [1] : vector<8x128xf32> to vector<8xf32>
    %3 = vector.shape_cast %2 : vector<8xf32> to vector<8x1xf32>
    %4 = vector.broadcast %3 : vector<8x1xf32> to vector<8x128xf32>
    %5 = arith.subf %0, %4 : vector<8x128xf32>
    %cst_3 = arith.constant 1.000000e+00 : f32
    %6 = vector.broadcast %cst_3 : f32 to vector<8x128xf32>
    %7 = arith.mulf %5, %6 : vector<8x128xf32>
    %8 = math.exp %7 : vector<8x128xf32>
    %cst_4 = arith.constant dense<0.000000e+00> : vector<8xf32>
    %9 = vector.multi_reduction <add>, %8, %cst_4 [1] : vector<8x128xf32> to vector<8xf32>
    %10 = vector.shape_cast %9 : vector<8xf32> to vector<8x1xf32>
    %11 = math.log %10 : vector<8x1xf32>
    %12 = vector.broadcast %11 : vector<8x1xf32> to vector<8x128xf32>
    %13 = arith.subf %7, %12 : vector<8x128xf32>
    %cst_5 = arith.constant dense<0xFF800000> : vector<8xf32>
    %14 = vector.multi_reduction <maximumf>, %1, %cst_5 [1] : vector<8x128xf32> to vector<8xf32>
    %15 = vector.shape_cast %14 : vector<8xf32> to vector<8x1xf32>
    %16 = vector.broadcast %15 : vector<8x1xf32> to vector<8x128xf32>
    %17 = arith.subf %1, %16 : vector<8x128xf32>
    %cst_6 = arith.constant 1.000000e+00 : f32
    %18 = vector.broadcast %cst_6 : f32 to vector<8x128xf32>
    %19 = arith.mulf %17, %18 : vector<8x128xf32>
    %20 = math.exp %19 : vector<8x128xf32>
    %cst_7 = arith.constant dense<0.000000e+00> : vector<8xf32>
    %21 = vector.multi_reduction <add>, %20, %cst_7 [1] : vector<8x128xf32> to vector<8xf32>
    %22 = vector.shape_cast %21 : vector<8xf32> to vector<8x1xf32>
    %23 = math.log %22 : vector<8x1xf32>
    %24 = vector.broadcast %23 : vector<8x1xf32> to vector<8x128xf32>
    %25 = arith.subf %19, %24 : vector<8x128xf32>
    %26 = arith.subf %25, %13 : vector<8x128xf32>
    %27 = arith.mulf %20, %26 : vector<8x128xf32>
    %cst_8 = arith.constant dense<0.000000e+00> : vector<8xf32>
    %28 = vector.multi_reduction <add>, %27, %cst_8 [1] : vector<8x128xf32> to vector<8xf32>
    %29 = vector.shape_cast %28 : vector<8xf32> to vector<8x1xf32>
    %30 = arith.divf %29, %22 : vector<8x1xf32>
    %c8_i32 = arith.constant 8 : i32
    %31 = arith.muli %arg0, %c8_i32 : i32
    %32 = tpu.iota {dimensions = array<i32: 0>} : vector<8x1xi32>
    %33 = vector.broadcast %31 : i32 to vector<8x1xi32>
    %34 = arith.addi %33, %32 : vector<8x1xi32>
    %c8_i32_9 = arith.constant 8 : i32
    %35 = vector.broadcast %c8_i32_9 : i32 to vector<8x1xi32>
    %36 = arith.cmpi slt, %34, %35 : vector<8x1xi32>
    %cst_10 = arith.constant 0.000000e+00 : f32
    %37 = vector.broadcast %cst_10 : f32 to vector<8x1xf32>
    %38 = arith.select %36, %30, %37 : vector<8x1xi1>, vector<8x1xf32>
    %39 = vector.shape_cast %38 : vector<8x1xf32> to vector<1x8x1xf32>
    %cst_11 = arith.constant dense<0.000000e+00> : vector<1xf32>
    %40 = vector.multi_reduction <add>, %39, %cst_11 [1, 2] : vector<1x8x1xf32> to vector<1xf32>
    %41 = vector.shape_cast %40 : vector<1xf32> to vector<1x1x1xf32>
    %42 = vector.extract %41[0, 0, 0] : f32 from vector<1x1x1xf32>
    %43 = vector.broadcast %42 : f32 to vector<1x8x128xf32>
    %c0_12 = arith.constant 0 : index
    %c0_13 = arith.constant 0 : index
    %c0_14 = arith.constant 0 : index
    %44 = vector.load %arg3[%c0_12, %c0_13, %c0_14] : memref<1x8x128xf32, #tpu.memory_space<vmem>>, vector<1x8x128xf32>
    tpu.vector_store %arg3[%c0_12, %c0_13, %c0_14], %43 {strides = array<i32>} : memref<1x8x128xf32, #tpu.memory_space<vmem>>, vector<1x8x128xf32>,
    return
  }
  func.func @transform_0(%arg0: i32) -> (i32, i32) {
    %c0_i32 = arith.constant 0 : i32
    %c0_i32_0 = arith.constant 0 : i32
    return %arg0, %c0_i32 : i32, i32
  }
  func.func @transform_1(%arg0: i32) -> (i32, i32) {
    %c0_i32 = arith.constant 0 : i32
    %c0_i32_0 = arith.constant 0 : i32
    return %arg0, %c0_i32 : i32, i32
  }
  func.func @transform_2(%arg0: i32) -> (i32, i32, i32) {
    %c0_i32 = arith.constant 0 : i32
    %c0_i32_0 = arith.constant 0 : i32
    %c0_i32_1 = arith.constant 0 : i32
    return %arg0, %c0_i32, %c0_i32_0 : i32, i32, i32
  }
}

</mosaic_0001>

<bundles_post_ra>
// kernel: _kl_distill_loss.1
= control target key start
LH: loop header
LB: loop body
LE: loop exit
PB: predicated region body
PF: predicated region fallthrough
CT: control target
= control target key end

     0   :  { %7 = vsyncpa [#allocation3], 0  ;;  %s198_s0 = inlined_call_operand.hbm [shape: f32[8,128], index: 0, kind: input, shape index: {}]   ;;  %s199_s1 = inlined_call_operand.hbm [shape: f32[8,128], index: 1, kind: input, shape index: {}]   ;;  %s200_s2 = inlined_call_operand.vmem [shape: f32[1,8,128], index: 2, kind: output, shape index: {}]  }
   0x1   :  { %s14_s11 = sshll.u32 %s198_s0, 4  ;;  %s15_s11 = int_to_ptr.hbm [resolvable:$true] %s14_s11 }
   0x2   :  { %8 = vsyncpa [#allocation5], 0  ;;  %s172_s12 = smov [#allocation2]   ;;  %s25_s16 = sshll.u32 %s199_s1, 4  ;;  %s26_s16 = int_to_ptr.hbm [resolvable:$true] %s25_s16 }
   0x3   :  { %s16_s13 = sshll.u32 %s172_s12, 4  ;;  %s173_s17 = smov [#allocation4]   ;;  %s17_s13 = int_to_ptr.vmem [resolvable:$true] %s16_s13 }
   0x4   :  { %19 = dma.hbm_to_vmem [thread:$0]  %s15_s11, 128, %s17_s13, [#allocation3]  }
   0x5   :  { %s27_s18 = sshll.u32 %s173_s17, 4  ;;  %s28_s18 = int_to_ptr.vmem [resolvable:$true] %s27_s18 }
   0x6   :  { %30 = dma.hbm_to_vmem [thread:$0]  %s26_s16, 128, %s28_s18, [#allocation5]  }
   0x7   :  { %168 = dma.done.wait [#allocation3], 128  }
   0x8   :  { %169 = vsyncadd [#allocation3], 4294967168 }
   0x9   :  { %170 = dma.done.wait [#allocation5], 128  }
   0xa   :  { %171 = vsyncadd [#allocation5], 4294967168  ;;  %v39_v0 = vld [vmem:[#allocation2] sm:$0xff]  ;;  %v40_v1 = vld [vmem:[#allocation4] sm:$0xff]  ;;  %vm87_vm4 = vcmask 7168  }
   0xb   :  { %41 = vmax.xlane.f32.xlu0 %v39_v0 }
  0x13   :  { %51 = vmax.xlane.f32.xlu0 %v40_v1 }
  0x7e   :  { %v42_v2 = vpop.xlane.xlu0 %41 }
  0x7f   :  { %v43_v3 = vsub.f32 %v39_v0, %v42_v2 }
  0x81   :  { %v44_v4 = vmul.f32 1.442695, %v43_v3 }
  0x83   :  { %110 = vpow2.f32 %v44_v4 }
  0x86   :  { %v52_v5 = vpop.xlane.xlu0 %51 }
  0x87   :  { %v53_v6 = vsub.f32 %v40_v1, %v52_v5 }
  0x89   :  { %v111_v7 = vpop.eup %110  ;;  %v54_v8 = vmul.f32 1.442695, %v53_v6 }
  0x8a   :  { %46 = vadd.xlane.f32.xlu1 %v111_v7 }
  0x8b   :  { %112 = vpow2.f32 %v54_v8 }
  0x91   :  { %v113_v9 = vpop.eup %112 }
  0x92   :  { %56 = vadd.xlane.f32.xlu1 %v113_v9 }
  0xfd   :  { %v47_v10 = vpop.xlane.xlu1 %46 }
  0xfe   :  { %114 = vlog2.f32 %v47_v10 }
 0x104   :  { %v115_v12 = vpop.eup %114 }
 0x105   :  { %v57_v11 = vpop.xlane.xlu1 %56  ;;  %v49_v13 = vmul.f32 0.6931472, %v115_v12 }
 0x106   :  { %116 = vlog2.f32 %v57_v11  ;;  %v76_v25 = vand.u32 2147483648, %v57_v11  ;;  %vm70_vm1 = vweird.f32 %v57_v11  ;;  %v74_v26 = vand.u32 2147483647, %v57_v11 }
 0x107   :  { %v50_v16 = vsub.f32 %v43_v3, %v49_v13  ;;  %118 = vrcp.f32 %v57_v11 }
 0x108   :  { %v77_v28 = vor.u32 1.1754944e-38, %v76_v25  ;;  %vm75_vm3 = vcmp.eq.f32.partialorder %v74_v26, 8.507059e+37 }
 0x10c   :  { %v117_v14 = vpop.eup %116 }
 0x10d   :  { %v59_v15 = vmul.f32 0.6931472, %v117_v14  ;;  %v119_v20 = vpop.eup %118 }
 0x10e   :  { %v66_v21 = vmul.f32 %v119_v20, %v57_v11  ;;  %vm71_vm0 = vweird.f32 %v119_v20 }
 0x10f   :  { %v60_v17 = vsub.f32 %v53_v6, %v59_v15  ;;  %vm72_vm2 = vmor %vm70_vm1, %vm71_vm0 }
 0x110   :  { %v67_v22 = vsub.f32 1.0, %v66_v21 }
 0x111   :  { %v61_v18 = vsub.f32 %v60_v17, %v50_v16 }
 0x112   :  { %v68_v23 = vmul.f32 %v119_v20, %v67_v22 }
 0x113   :  { %v62_v19 = vmul.f32 %v113_v9, %v61_v18 }
 0x114   :  { %v69_v24 = vadd.f32 %v119_v20, %v68_v23 }
 0x115   :  { %63 = vadd.xlane.f32.xlu2 %v62_v19 }
 0x116   :  { %v73_v27 = vsel %vm72_vm2, %v119_v20, %v69_v24 }
 0x117   :  { %v78_v29 = vsel %vm75_vm3, %v77_v28, %v73_v27 }
 0x188   :  { %v64_v30 = vpop.xlane.xlu2 %63 }
 0x189   :  { %v79_v31 = vmul.f32 %v78_v29, %v64_v30 }
 0x18b   :  { %v88_v32 = vsel %vm87_vm4, %v79_v31, 0.0 }
 0x18c   :  { %89 = vadd.xlane.f32.xlu2 %v88_v32 }
 0x1ff   :  { %v90_v33 = vpop.xlane.xlu2 %89 }
 0x200   :  { %v91_v34 = vrot.slane %v90_v33, 4 }
 0x202   :  { %v92_v35 = vadd.f32 %v91_v34, %v90_v33 }
 0x204   :  { %v93_v36 = vrot.slane %v92_v35, 2 }
 0x206   :  { %v94_v37 = vadd.f32 %v93_v36, %v92_v35 }
 0x208   :  { %v95_v38 = vrot.slane %v94_v37, 1 }
 0x20a   :  { %v96_v39 = vadd.f32 %v95_v38, %v94_v37 }
 0x20c   :  { %106 = vpush %v96_v39 }
 0x23d   :  { %s107_s0 = spop %106 }
 0x23e   :  { %v98_v40 = vstv %s107_s0 }
 0x23f   :  { %99 = vst [vmem:[%s200_s2] sm:$0xff] %v98_v40 }
 0x240   :  { %104 = vsyncpa [#allocation3], 1 }
 0x241   :  { %105 = vsyncpa [#allocation5], 1 }

</bundles_post_ra>
